<compile_context>
chip_gen: v7x
topology: tpu7x:2x2x1
jax: 0.10.0
libtpu: 0.0.40
codegen_flags: <defaults>
</compile_context>

<pallas_src>
import functools
import math

import jax
import jax.numpy as jnp
from jax.experimental import pallas as pl
from jax.experimental.pallas import tpu as pltpu


def _round_up(x, m):
    return ((x + m - 1) // m) * m


# Order of the linear layers packed into the weight / scalar slabs.
_LAYERS = ("e1", "e2", "e3", "f1", "f2", "d1", "d2", "d3")


# ---------------------------------------------------------------------------
# Static packing layout (Python ints only; closed over by the kernel).
# ---------------------------------------------------------------------------
def _build_layout(obs_dim, z_dim=20, h_dim=256, a_dim=1):
    assert a_dim == 1, "cat([z, a]) @ W1 == z @ Wz + a * wa only holds for a_dim == 1"
    # (fan_in stored in the weight slab, fan_out) per layer; fw layer-1 stores
    # only its z-rows here (the action row lives in the f32 scalar slab).
    dims = {
        "e1": (obs_dim, h_dim), "e2": (h_dim, h_dim), "e3": (h_dim, z_dim),
        "f1": (z_dim, h_dim),   "f2": (h_dim, z_dim),
        "d1": (z_dim, h_dim),   "d2": (h_dim, h_dim), "d3": (h_dim, obs_dim),
    }
    lane = _round_up(max(h_dim, obs_dim, z_dim), 128)
    offs, row = {}, 0
    for name in _LAYERS:
        fi, fo = dims[name]
        offs[name] = (row, fi, fo)
        row += _round_up(fi, 16)          # keep bf16 (16,128) sublane alignment
    bias_rows = {name: i for i, name in enumerate(_LAYERS)}
    bias_rows["wa"] = len(_LAYERS)        # action row of fw layer-1, kept f32
    return dict(obs_dim=obs_dim, z_dim=z_dim, h_dim=h_dim, a_dim=a_dim,
                lane=lane, w_rows=row, s_rows=len(_LAYERS) + 1,
                offs=offs, bias_rows=bias_rows)


# ---------------------------------------------------------------------------
# Fused kernel: encoder(o) + encoder(o_next) + forward-model + decoder in VMEM.
# ---------------------------------------------------------------------------
def _make_kernel(layout):
    offs, brow = layout["offs"], layout["bias_rows"]
    h_dim, z_dim, obs_dim = layout["h_dim"], layout["z_dim"], layout["obs_dim"]

    def kernel(o_ref, on_ref, a_ref, w_ref, s_ref,
               z_ref, orec_ref, znext_ref, ztgt_ref):
        def W(name):
            r, fi, fo = offs[name]
            return w_ref[r:r + fi, :fo]                 # static, 16-aligned view

        def Bias(name, fo):
            i = brow[name]
            return s_ref[i:i + 1, :fo]                  # (1, fo) f32

        def dot(x_f32, w_bf16):
            # bf16 MXU inputs, f32 accumulation; elementwise math stays in f32.
            return jnp.dot(x_f32.astype(jnp.bfloat16), w_bf16,
                           preferred_element_type=jnp.float32)

        def encode(x):
            h = jnp.maximum(dot(x, W("e1")) + Bias("e1", h_dim), 0.0)
            h = jnp.maximum(dot(h, W("e2")) + Bias("e2", h_dim), 0.0)
            return dot(h, W("e3")) + Bias("e3", z_dim)

        # Encoder runs on o and o_next separately: weights are VMEM-resident
        # (one DMA), and no sublane-unaligned split of a stacked latent.
        z = encode(o_ref[...])
        z_target = encode(on_ref[...])

        # Forward model: Linear(cat([z, a])) == z @ Wz + a * wa   (a_dim == 1)
        h = dot(z, W("f1")) + a_ref[...] * Bias("wa", h_dim) + Bias("f1", h_dim)
        h = jnp.maximum(h, 0.0)
        z_next = dot(h, W("f2")) + Bias("f2", z_dim)

        # Decoder on z.
        h = jnp.maximum(dot(z, W("d1")) + Bias("d1", h_dim), 0.0)
        h = jnp.maximum(dot(h, W("d2")) + Bias("d2", h_dim), 0.0)
        o_rec = jax.nn.sigmoid(dot(h, W("d3")) + Bias("d3", obs_dim))

        z_ref[...] = z
        orec_ref[...] = o_rec
        znext_ref[...] = z_next
        ztgt_ref[...] = z_target

    return kernel


# ---------------------------------------------------------------------------
# Wrapper: one gridless pallas_call, full arrays resident in VMEM.
# ---------------------------------------------------------------------------
def ae_deterministic_fw_forward(o, a, o_next, w_slab, s_slab, *, layout):
    """Matches AE_DeterministicFW.forward: returns (z, o_rec, z_next, z_target)."""
    B, obs_dim = o.shape
    z_dim, h_dim = layout["z_dim"], layout["h_dim"]
    assert obs_dim == layout["obs_dim"]
    assert o_next.shape == (B, obs_dim) and a.shape == (B, layout["a_dim"])

    vmem = pl.BlockSpec(memory_space=pltpu.MemorySpace.VMEM)

    flops = 2 * B * (2 * (obs_dim * h_dim + h_dim * h_dim + h_dim * z_dim)  # enc x2
                     + (z_dim * h_dim + h_dim * z_dim)                      # fw model
                     + (z_dim * h_dim + h_dim * h_dim + h_dim * obs_dim))   # decoder
    bytes_accessed = (o.size * 4 + o_next.size * 4 + a.size * 4
                      + int(w_slab.size) * 2 + int(s_slab.size) * 4
                      + B * (3 * z_dim + obs_dim) * 4)

    out_shape = (jax.ShapeDtypeStruct((B, z_dim), jnp.float32),    # z
                 jax.ShapeDtypeStruct((B, obs_dim), jnp.float32),  # o_rec
                 jax.ShapeDtypeStruct((B, z_dim), jnp.float32),    # z_next
                 jax.ShapeDtypeStruct((B, z_dim), jnp.float32))    # z_target

    z, o_rec, z_next, z_target = pl.pallas_call(
        _make_kernel(layout),
        out_shape=out_shape,
        in_specs=[vmem] * 5,
        out_specs=(vmem, vmem, vmem, vmem),
        cost_estimate=pl.CostEstimate(flops=flops,
                                      transcendentals=B * obs_dim,
                                      bytes_accessed=bytes_accessed),
        compiler_params=pltpu.CompilerParams(vmem_limit_bytes=16 * 1024 * 1024),
    )(o, o_next, a, w_slab, s_slab)

    return z, o_rec, z_next, z_target


# ---------------------------------------------------------------------------
# Parameter init (PyTorch nn.Linear style: U(-1/sqrt(fan_in), +1/sqrt(fan_in)))
# packed at init time into:
#   w_slab: (w_rows, 256) bf16  — all weight matrices, row-stacked (one DMA)
#   s_slab: (9, 256)     f32    — 8 biases + the fw-model action row (wa)
# ---------------------------------------------------------------------------
def init_params(obs_dim, z_dim=20, h_dim=256, a_dim=1, seed=42):
    layout = _build_layout(obs_dim, z_dim, h_dim, a_dim)
    keys = jax.random.split(jax.random.PRNGKey(seed), len(_LAYERS))

    def linear(key, fan_in, fan_out):
        kw, kb = jax.random.split(key)
        bound = 1.0 / math.sqrt(float(fan_in))
        w = jax.random.uniform(kw, (fan_in, fan_out), jnp.float32, -bound, bound)
        b = jax.random.uniform(kb, (fan_out,), jnp.float32, -bound, bound)
        return w, b

    full_dims = {"e1": (obs_dim, h_dim), "e2": (h_dim, h_dim), "e3": (h_dim, z_dim),
                 "f1": (z_dim + a_dim, h_dim), "f2": (h_dim, z_dim),
                 "d1": (z_dim, h_dim), "d2": (h_dim, h_dim), "d3": (h_dim, obs_dim)}

    w_slab = jnp.zeros((layout["w_rows"], layout["lane"]), jnp.bfloat16)
    s_slab = jnp.zeros((layout["s_rows"], layout["lane"]), jnp.float32)

    for key, name in zip(keys, _LAYERS):
        fi_full, fo = full_dims[name]
        w, b = linear(key, fi_full, fo)
        row, fi, _ = layout["offs"][name]
        w_slab = w_slab.at[row:row + fi, :fo].set(w[:fi].astype(jnp.bfloat16))
        s_slab = s_slab.at[layout["bias_rows"][name], :fo].set(b)
        if name == "f1":  # action row of fw layer-1: stays f32 for the VPU path
            s_slab = s_slab.at[layout["bias_rows"]["wa"], :h_dim].set(w[z_dim])

    return w_slab, s_slab, layout


# ---------------------------------------------------------------------------
# Pure-JAX reference with identical numerics (bf16 MXU inputs, f32 accumulate).
# NOTE: weights are stored bf16 (HBM-bytes-bound workload), so this validates
# self-consistency of the kernel, not bit-fidelity to an f32 PyTorch model.
# ---------------------------------------------------------------------------
def _ref_forward(o, a, o_next, w_slab, s_slab, layout):
    offs, brow = layout["offs"], layout["bias_rows"]
    h_dim, z_dim, obs_dim = layout["h_dim"], layout["z_dim"], layout["obs_dim"]

    def W(name):
        r, fi, fo = offs[name]
        return w_slab[r:r + fi, :fo]

    def Bias(name, fo):
        i = brow[name]
        return s_slab[i:i + 1, :fo]

    def dot(x, w):
        return jnp.dot(x.astype(jnp.bfloat16), w, preferred_element_type=jnp.float32)

    def encode(x):
        h = jnp.maximum(dot(x, W("e1")) + Bias("e1", h_dim), 0.0)
        h = jnp.maximum(dot(h, W("e2")) + Bias("e2", h_dim), 0.0)
        return dot(h, W("e3")) + Bias("e3", z_dim)

    z = encode(o)
    z_target = encode(o_next)
    h = jnp.maximum(dot(z, W("f1")) + a * Bias("wa", h_dim) + Bias("f1", h_dim), 0.0)
    z_next = dot(h, W("f2")) + Bias("f2", z_dim)
    h = jnp.maximum(dot(z, W("d1")) + Bias("d1", h_dim), 0.0)
    h = jnp.maximum(dot(h, W("d2")) + Bias("d2", h_dim), 0.0)
    o_rec = jax.nn.sigmoid(dot(h, W("d3")) + Bias("d3", obs_dim))
    return z, o_rec, z_next, z_target


if __name__ == "__main__":
    B, OBS_DIM, Z_DIM, H_DIM, A_DIM = 2, 64, 20, 256, 1

    w_slab, s_slab, layout = init_params(OBS_DIM, Z_DIM, H_DIM, A_DIM, seed=42)

    k = jax.random.PRNGKey(0)
    ko, ka, kn = jax.random.split(k, 3)
    o = jax.random.uniform(ko, (B, OBS_DIM), jnp.float32)        # obs in [0, 1]
    a = jax.random.normal(ka, (B, A_DIM), jnp.float32)           # action
    o_next = jax.random.uniform(kn, (B, OBS_DIM), jnp.float32)   # next obs

    fwd = jax.jit(functools.partial(ae_deterministic_fw_forward, layout=layout))
    outs = jax.block_until_ready(fwd(o, a, o_next, w_slab, s_slab))
    z, o_rec, z_next, z_target = outs

    assert z.shape == (B, Z_DIM) and z_target.shape == (B, Z_DIM)
    assert z_next.shape == (B, Z_DIM) and o_rec.shape == (B, OBS_DIM)

    refs = _ref_forward(o, a, o_next, w_slab, s_slab, layout)
    for got, want in zip(outs, refs):
        assert jnp.allclose(got, want, atol=2e-3, rtol=2e-3), (
            float(jnp.max(jnp.abs(got - want))))

    print("KERNEL_OK")
</pallas_src>

<mosaic_0001>
module attributes {stable_mosaic.version = 11 : i64} {
  func.func @kernel(%arg0: memref<2x64xf32, #tpu.memory_space<vmem>>, %arg1: memref<2x64xf32, #tpu.memory_space<vmem>>, %arg2: memref<2x1xf32, #tpu.memory_space<vmem>>, %arg3: memref<1408x256xbf16, #tpu.memory_space<vmem>>, %arg4: memref<9x256xf32, #tpu.memory_space<vmem>>, %arg5: memref<2x20xf32, #tpu.memory_space<vmem>>, %arg6: memref<2x64xf32, #tpu.memory_space<vmem>>, %arg7: memref<2x20xf32, #tpu.memory_space<vmem>>, %arg8: memref<2x20xf32, #tpu.memory_space<vmem>>) attributes {dimension_semantics = [], scalar_prefetch = 0 : i64, scratch_operands = 0 : i64, tpu.core_type = #tpu.core_type<tc>} {
    %c0 = arith.constant 0 : index
    %c0_0 = arith.constant 0 : index
    %0 = vector.load %arg0[%c0, %c0_0] : memref<2x64xf32, #tpu.memory_space<vmem>>, vector<2x64xf32>
    %c0_1 = arith.constant 0 : index
    %c0_2 = arith.constant 0 : index
    %1 = vector.load %arg3[%c0_1, %c0_2] : memref<1408x256xbf16, #tpu.memory_space<vmem>>, vector<64x256xbf16>
    %2 = arith.truncf %0 : vector<2x64xf32> to vector<2x64xbf16>
    %cst = arith.constant dense<0.000000e+00> : vector<2x256xf32>
    %3 = tpu.matmul %2, %1, %cst {dimension_numbers = #tpu.dot_dimension_numbers<[1], [0], [0], [1], [0, 0, 1, 1], [], []>} : vector<2x64xbf16>, vector<64x256xbf16>, vector<2x256xf32> -> vector<2x256xf32>
    %c0_3 = arith.constant 0 : index
    %c0_4 = arith.constant 0 : index
    %4 = vector.load %arg4[%c0_3, %c0_4] : memref<9x256xf32, #tpu.memory_space<vmem>>, vector<1x256xf32>
    %5 = vector.broadcast %4 : vector<1x256xf32> to vector<2x256xf32>
    %6 = arith.addf %3, %5 : vector<2x256xf32>
    %cst_5 = arith.constant 0.000000e+00 : f32
    %7 = vector.broadcast %cst_5 : f32 to vector<2x256xf32>
    %8 = arith.maximumf %6, %7 : vector<2x256xf32>
    %c64 = arith.constant 64 : index
    %c0_6 = arith.constant 0 : index
    %9 = vector.load %arg3[%c64, %c0_6] : memref<1408x256xbf16, #tpu.memory_space<vmem>>, vector<256x256xbf16>
    %10 = arith.truncf %8 : vector<2x256xf32> to vector<2x256xbf16>
    %cst_7 = arith.constant dense<0.000000e+00> : vector<2x256xf32>
    %11 = tpu.matmul %10, %9, %cst_7 {dimension_numbers = #tpu.dot_dimension_numbers<[1], [0], [0], [1], [0, 0, 1, 1], [], []>} : vector<2x256xbf16>, vector<256x256xbf16>, vector<2x256xf32> -> vector<2x256xf32>
    %c1 = arith.constant 1 : index
    %c0_8 = arith.constant 0 : index
    %12 = vector.load %arg4[%c1, %c0_8] : memref<9x256xf32, #tpu.memory_space<vmem>>, vector<1x256xf32>
    %13 = vector.broadcast %12 : vector<1x256xf32> to vector<2x256xf32>
    %14 = arith.addf %11, %13 : vector<2x256xf32>
    %cst_9 = arith.constant 0.000000e+00 : f32
    %15 = vector.broadcast %cst_9 : f32 to vector<2x256xf32>
    %16 = arith.maximumf %14, %15 : vector<2x256xf32>
    %c320 = arith.constant 320 : index
    %c0_10 = arith.constant 0 : index
    %17 = vector.load %arg3[%c320, %c0_10] : memref<1408x256xbf16, #tpu.memory_space<vmem>>, vector<256x20xbf16>
    %18 = arith.truncf %16 : vector<2x256xf32> to vector<2x256xbf16>
    %cst_11 = arith.constant dense<0.000000e+00> : vector<2x20xf32>
    %19 = tpu.matmul %18, %17, %cst_11 {dimension_numbers = #tpu.dot_dimension_numbers<[1], [0], [0], [1], [0, 0, 1, 1], [], []>} : vector<2x256xbf16>, vector<256x20xbf16>, vector<2x20xf32> -> vector<2x20xf32>
    %c2 = arith.constant 2 : index
    %c0_12 = arith.constant 0 : index
    %20 = vector.load %arg4[%c2, %c0_12] : memref<9x256xf32, #tpu.memory_space<vmem>>, vector<1x20xf32>
    %21 = vector.broadcast %20 : vector<1x20xf32> to vector<2x20xf32>
    %22 = arith.addf %19, %21 : vector<2x20xf32>
    %c0_13 = arith.constant 0 : index
    %c0_14 = arith.constant 0 : index
    %23 = vector.load %arg1[%c0_13, %c0_14] : memref<2x64xf32, #tpu.memory_space<vmem>>, vector<2x64xf32>
    %c0_15 = arith.constant 0 : index
    %c0_16 = arith.constant 0 : index
    %24 = vector.load %arg3[%c0_15, %c0_16] : memref<1408x256xbf16, #tpu.memory_space<vmem>>, vector<64x256xbf16>
    %25 = arith.truncf %23 : vector<2x64xf32> to vector<2x64xbf16>
    %cst_17 = arith.constant dense<0.000000e+00> : vector<2x256xf32>
    %26 = tpu.matmul %25, %24, %cst_17 {dimension_numbers = #tpu.dot_dimension_numbers<[1], [0], [0], [1], [0, 0, 1, 1], [], []>} : vector<2x64xbf16>, vector<64x256xbf16>, vector<2x256xf32> -> vector<2x256xf32>
    %c0_18 = arith.constant 0 : index
    %c0_19 = arith.constant 0 : index
    %27 = vector.load %arg4[%c0_18, %c0_19] : memref<9x256xf32, #tpu.memory_space<vmem>>, vector<1x256xf32>
    %28 = vector.broadcast %27 : vector<1x256xf32> to vector<2x256xf32>
    %29 = arith.addf %26, %28 : vector<2x256xf32>
    %cst_20 = arith.constant 0.000000e+00 : f32
    %30 = vector.broadcast %cst_20 : f32 to vector<2x256xf32>
    %31 = arith.maximumf %29, %30 : vector<2x256xf32>
    %c64_21 = arith.constant 64 : index
    %c0_22 = arith.constant 0 : index
    %32 = vector.load %arg3[%c64_21, %c0_22] : memref<1408x256xbf16, #tpu.memory_space<vmem>>, vector<256x256xbf16>
    %33 = arith.truncf %31 : vector<2x256xf32> to vector<2x256xbf16>
    %cst_23 = arith.constant dense<0.000000e+00> : vector<2x256xf32>
    %34 = tpu.matmul %33, %32, %cst_23 {dimension_numbers = #tpu.dot_dimension_numbers<[1], [0], [0], [1], [0, 0, 1, 1], [], []>} : vector<2x256xbf16>, vector<256x256xbf16>, vector<2x256xf32> -> vector<2x256xf32>
    %c1_24 = arith.constant 1 : index
    %c0_25 = arith.constant 0 : index
    %35 = vector.load %arg4[%c1_24, %c0_25] : memref<9x256xf32, #tpu.memory_space<vmem>>, vector<1x256xf32>
    %36 = vector.broadcast %35 : vector<1x256xf32> to vector<2x256xf32>
    %37 = arith.addf %34, %36 : vector<2x256xf32>
    %cst_26 = arith.constant 0.000000e+00 : f32
    %38 = vector.broadcast %cst_26 : f32 to vector<2x256xf32>
    %39 = arith.maximumf %37, %38 : vector<2x256xf32>
    %c320_27 = arith.constant 320 : index
    %c0_28 = arith.constant 0 : index
    %40 = vector.load %arg3[%c320_27, %c0_28] : memref<1408x256xbf16, #tpu.memory_space<vmem>>, vector<256x20xbf16>
    %41 = arith.truncf %39 : vector<2x256xf32> to vector<2x256xbf16>
    %cst_29 = arith.constant dense<0.000000e+00> : vector<2x20xf32>
    %42 = tpu.matmul %41, %40, %cst_29 {dimension_numbers = #tpu.dot_dimension_numbers<[1], [0], [0], [1], [0, 0, 1, 1], [], []>} : vector<2x256xbf16>, vector<256x20xbf16>, vector<2x20xf32> -> vector<2x20xf32>
    %c2_30 = arith.constant 2 : index
    %c0_31 = arith.constant 0 : index
    %43 = vector.load %arg4[%c2_30, %c0_31] : memref<9x256xf32, #tpu.memory_space<vmem>>, vector<1x20xf32>
    %44 = vector.broadcast %43 : vector<1x20xf32> to vector<2x20xf32>
    %45 = arith.addf %42, %44 : vector<2x20xf32>
    %c576 = arith.constant 576 : index
    %c0_32 = arith.constant 0 : index
    %46 = vector.load %arg3[%c576, %c0_32] : memref<1408x256xbf16, #tpu.memory_space<vmem>>, vector<20x256xbf16>
    %47 = arith.truncf %22 : vector<2x20xf32> to vector<2x20xbf16>
    %cst_33 = arith.constant dense<0.000000e+00> : vector<2x256xf32>
    %48 = tpu.matmul %47, %46, %cst_33 {dimension_numbers = #tpu.dot_dimension_numbers<[1], [0], [0], [1], [0, 0, 1, 1], [], []>} : vector<2x20xbf16>, vector<20x256xbf16>, vector<2x256xf32> -> vector<2x256xf32>
    %c0_34 = arith.constant 0 : index
    %c0_35 = arith.constant 0 : index
    %49 = vector.load %arg2[%c0_34, %c0_35] : memref<2x1xf32, #tpu.memory_space<vmem>>, vector<2x1xf32>
    %c8 = arith.constant 8 : index
    %c0_36 = arith.constant 0 : index
    %50 = vector.load %arg4[%c8, %c0_36] : memref<9x256xf32, #tpu.memory_space<vmem>>, vector<1x256xf32>
    %51 = vector.broadcast %49 : vector<2x1xf32> to vector<2x256xf32>
    %52 = vector.broadcast %50 : vector<1x256xf32> to vector<2x256xf32>
    %53 = arith.mulf %51, %52 : vector<2x256xf32>
    %54 = arith.addf %48, %53 : vector<2x256xf32>
    %c3 = arith.constant 3 : index
    %c0_37 = arith.constant 0 : index
    %55 = vector.load %arg4[%c3, %c0_37] : memref<9x256xf32, #tpu.memory_space<vmem>>, vector<1x256xf32>
    %56 = vector.broadcast %55 : vector<1x256xf32> to vector<2x256xf32>
    %57 = arith.addf %54, %56 : vector<2x256xf32>
    %cst_38 = arith.constant 0.000000e+00 : f32
    %58 = vector.broadcast %cst_38 : f32 to vector<2x256xf32>
    %59 = arith.maximumf %57, %58 : vector<2x256xf32>
    %c608 = arith.constant 608 : index
    %c0_39 = arith.constant 0 : index
    %60 = vector.load %arg3[%c608, %c0_39] : memref<1408x256xbf16, #tpu.memory_space<vmem>>, vector<256x20xbf16>
    %61 = arith.truncf %59 : vector<2x256xf32> to vector<2x256xbf16>
    %cst_40 = arith.constant dense<0.000000e+00> : vector<2x20xf32>
    %62 = tpu.matmul %61, %60, %cst_40 {dimension_numbers = #tpu.dot_dimension_numbers<[1], [0], [0], [1], [0, 0, 1, 1], [], []>} : vector<2x256xbf16>, vector<256x20xbf16>, vector<2x20xf32> -> vector<2x20xf32>
    %c4 = arith.constant 4 : index
    %c0_41 = arith.constant 0 : index
    %63 = vector.load %arg4[%c4, %c0_41] : memref<9x256xf32, #tpu.memory_space<vmem>>, vector<1x20xf32>
    %64 = vector.broadcast %63 : vector<1x20xf32> to vector<2x20xf32>
    %65 = arith.addf %62, %64 : vector<2x20xf32>
    %c864 = arith.constant 864 : index
    %c0_42 = arith.constant 0 : index
    %66 = vector.load %arg3[%c864, %c0_42] : memref<1408x256xbf16, #tpu.memory_space<vmem>>, vector<20x256xbf16>
    %67 = arith.truncf %22 : vector<2x20xf32> to vector<2x20xbf16>
    %cst_43 = arith.constant dense<0.000000e+00> : vector<2x256xf32>
    %68 = tpu.matmul %67, %66, %cst_43 {dimension_numbers = #tpu.dot_dimension_numbers<[1], [0], [0], [1], [0, 0, 1, 1], [], []>} : vector<2x20xbf16>, vector<20x256xbf16>, vector<2x256xf32> -> vector<2x256xf32>
    %c5 = arith.constant 5 : index
    %c0_44 = arith.constant 0 : index
    %69 = vector.load %arg4[%c5, %c0_44] : memref<9x256xf32, #tpu.memory_space<vmem>>, vector<1x256xf32>
    %70 = vector.broadcast %69 : vector<1x256xf32> to vector<2x256xf32>
    %71 = arith.addf %68, %70 : vector<2x256xf32>
    %cst_45 = arith.constant 0.000000e+00 : f32
    %72 = vector.broadcast %cst_45 : f32 to vector<2x256xf32>
    %73 = arith.maximumf %71, %72 : vector<2x256xf32>
    %c896 = arith.constant 896 : index
    %c0_46 = arith.constant 0 : index
    %74 = vector.load %arg3[%c896, %c0_46] : memref<1408x256xbf16, #tpu.memory_space<vmem>>, vector<256x256xbf16>
    %75 = arith.truncf %73 : vector<2x256xf32> to vector<2x256xbf16>
    %cst_47 = arith.constant dense<0.000000e+00> : vector<2x256xf32>
    %76 = tpu.matmul %75, %74, %cst_47 {dimension_numbers = #tpu.dot_dimension_numbers<[1], [0], [0], [1], [0, 0, 1, 1], [], []>} : vector<2x256xbf16>, vector<256x256xbf16>, vector<2x256xf32> -> vector<2x256xf32>
    %c6 = arith.constant 6 : index
    %c0_48 = arith.constant 0 : index
    %77 = vector.load %arg4[%c6, %c0_48] : memref<9x256xf32, #tpu.memory_space<vmem>>, vector<1x256xf32>
    %78 = vector.broadcast %77 : vector<1x256xf32> to vector<2x256xf32>
    %79 = arith.addf %76, %78 : vector<2x256xf32>
    %cst_49 = arith.constant 0.000000e+00 : f32
    %80 = vector.broadcast %cst_49 : f32 to vector<2x256xf32>
    %81 = arith.maximumf %79, %80 : vector<2x256xf32>
    %c1152 = arith.constant 1152 : index
    %c0_50 = arith.constant 0 : index
    %82 = vector.load %arg3[%c1152, %c0_50] : memref<1408x256xbf16, #tpu.memory_space<vmem>>, vector<256x64xbf16>
    %83 = arith.truncf %81 : vector<2x256xf32> to vector<2x256xbf16>
    %cst_51 = arith.constant dense<0.000000e+00> : vector<2x64xf32>
    %84 = tpu.matmul %83, %82, %cst_51 {dimension_numbers = #tpu.dot_dimension_numbers<[1], [0], [0], [1], [0, 0, 1, 1], [], []>} : vector<2x256xbf16>, vector<256x64xbf16>, vector<2x64xf32> -> vector<2x64xf32>
    %c7 = arith.constant 7 : index
    %c0_52 = arith.constant 0 : index
    %85 = vector.load %arg4[%c7, %c0_52] : memref<9x256xf32, #tpu.memory_space<vmem>>, vector<1x64xf32>
    %86 = vector.broadcast %85 : vector<1x64xf32> to vector<2x64xf32>
    %87 = arith.addf %84, %86 : vector<2x64xf32>
    %88 = arith.negf %87 : vector<2x64xf32>
    %89 = math.exp %88 : vector<2x64xf32>
    %cst_53 = arith.constant 1.000000e+00 : f32
    %90 = vector.broadcast %cst_53 : f32 to vector<2x64xf32>
    %91 = arith.addf %90, %89 : vector<2x64xf32>
    %92 = arith.divf %90, %91 : vector<2x64xf32>
    %c0_54 = arith.constant 0 : index
    %c0_55 = arith.constant 0 : index
    %93 = vector.load %arg5[%c0_54, %c0_55] : memref<2x20xf32, #tpu.memory_space<vmem>>, vector<2x20xf32>
    tpu.vector_store %arg5[%c0_54, %c0_55], %22 {strides = array<i32>} : memref<2x20xf32, #tpu.memory_space<vmem>>, vector<2x20xf32>,
    %c0_56 = arith.constant 0 : index
    %c0_57 = arith.constant 0 : index
    %94 = vector.load %arg6[%c0_56, %c0_57] : memref<2x64xf32, #tpu.memory_space<vmem>>, vector<2x64xf32>
    tpu.vector_store %arg6[%c0_56, %c0_57], %92 {strides = array<i32>} : memref<2x64xf32, #tpu.memory_space<vmem>>, vector<2x64xf32>,
    %c0_58 = arith.constant 0 : index
    %c0_59 = arith.constant 0 : index
    %95 = vector.load %arg7[%c0_58, %c0_59] : memref<2x20xf32, #tpu.memory_space<vmem>>, vector<2x20xf32>
    tpu.vector_store %arg7[%c0_58, %c0_59], %65 {strides = array<i32>} : memref<2x20xf32, #tpu.memory_space<vmem>>, vector<2x20xf32>,
    %c0_60 = arith.constant 0 : index
    %c0_61 = arith.constant 0 : index
    %96 = vector.load %arg8[%c0_60, %c0_61] : memref<2x20xf32, #tpu.memory_space<vmem>>, vector<2x20xf32>
    tpu.vector_store %arg8[%c0_60, %c0_61], %45 {strides = array<i32>} : memref<2x20xf32, #tpu.memory_space<vmem>>, vector<2x20xf32>,
    return
  }
}

</mosaic_0001>

<bundles_post_ra>
// kernel: ae_deterministic_fw_forward.1
= control target key start
LH: loop header
LB: loop body
LE: loop exit
PB: predicated region body
PF: predicated region fallthrough
CT: control target
= control target key end

     0   :  { %14 = vsyncpa [#allocation3], 0  ;;  %s2471_s0 = inlined_call_operand.vmem [shape: f32[2,64], index: 0, kind: input, shape index: {}]   ;;  %s2472_s1 = inlined_call_operand.vmem [shape: f32[2,64], index: 1, kind: input, shape index: {}]   ;;  %s2473_s2 = inlined_call_operand.vmem [shape: f32[2,1], index: 2, kind: input, shape index: {}]   ;;  %s2474_s3 = inlined_call_operand.hbm [shape: bf16[1408,256], index: 3, kind: input, shape index: {}]   ;;  %s2475_s4 = inlined_call_operand.hbm [shape: f32[9,256], index: 4, kind: input, shape index: {}]   ;;  %s2476_s5 = inlined_call_operand.hbm [shape: f32[2,20], index: 5, kind: output, shape index: {0}]   ;;  %s2477_s6 = inlined_call_operand.hbm [shape: f32[2,64], index: 6, kind: output, shape index: {1}]   ;;  %s2478_s7 = inlined_call_operand.hbm [shape: f32[2,20], index: 7, kind: output, shape index: {2}]   ;;  %s2479_s8 = inlined_call_operand.hbm [shape: f32[2,20], index: 8, kind: output, shape index: {3}]  }
   0x1   :  { %15 = vsyncpa [#allocation6], 0 }
   0x2   :  { %16 = vsyncpa [#allocation4], 0 }
   0x3   :  { %17 = vsyncpa [#allocation9], 0 }
   0x4   :  { %18 = vsyncpa [#allocation12], 0  ;;  %s2118_s27 = smov [#allocation2]   ;;  %s1976_s9 = scalar_lea.hbm %s2474_s3, 22528 }
   0x5   :  { %s30_s28 = sshll.u32 %s2118_s27, 4  ;;  %p1977_p0 = scmp.ne.s32.totalorder %s2474_s3, %s1976_s9  ;;  %s31_s28 = int_to_ptr.vmem [resolvable:$true] %s30_s28 }
   0x6   :  { %p1980_p1 = scmp.lt.u32.totalorder %s1976_s9, %s2474_s3 }
   0x8   :  { %p1982_p2 = pnand %p1980_p1, %p1977_p0 }
   0xa   :  { %1985 = shalt.err (!%p1982_p2)
}
   0xb   :  { %s1986_s14 = scalar_lea.vmem %s31_s28, 22528  ;;  %p1991_p4 = scmp.lt.s32.totalorder %s31_s28, %s31_s28 }
   0xc   :  { %p1987_p3 = scmp.ne.s32.totalorder %s31_s28, %s1986_s14  ;;  %p1992_p5 = scmp.lt.s32.totalorder %s1986_s14, %s1986_s14 }
   0xe   :  { %p1993_p6 = por %p1992_p5, %p1991_p4 }
  0x10   :  { %p1994_p7 = pnand %p1993_p6, %p1987_p3 }
  0x12   :  { %1997 = shalt.err (!%p1994_p7)
}
  0x13   :  { %s2119_s15 = smov 128   ;;  %s2120_s16 = smov 8  }
  0x14   :  { %36 = dma.hbm_to_vmem [thread:$0]  %s2474_s3, 22528, %s31_s28, [#allocation3], %s2119_s15, %s2119_s15, %s2120_s16  }
  0x15   :  { %s2121_s19 = smov [#allocation5]   ;;  %s1998_s23 = scalar_lea.hbm %s2475_s4, 512 }
  0x16   :  { %s42_s20 = sshll.u32 %s2121_s19, 4  ;;  %p1999_p8 = scmp.ne.s32.totalorder %s2475_s4, %s1998_s23  ;;  %s43_s20 = int_to_ptr.vmem [resolvable:$true] %s42_s20 }
  0x17   :  { %p2002_p9 = scmp.lt.u32.totalorder %s1998_s23, %s2475_s4 }
  0x19   :  { %p2004_p10 = pnand %p2002_p9, %p1999_p8 }
  0x1b   :  { %2007 = shalt.err (!%p2004_p10)
}
  0x1c   :  { %s2008_s29 = scalar_lea.vmem %s43_s20, 512  ;;  %p2013_p12 = scmp.lt.s32.totalorder %s43_s20, %s43_s20 }
  0x1d   :  { %p2009_p11 = scmp.ne.s32.totalorder %s43_s20, %s2008_s29  ;;  %p2014_p13 = scmp.lt.s32.totalorder %s2008_s29, %s2008_s29 }
  0x1f   :  { %p2015_p0 = por %p2014_p13, %p2013_p12 }
  0x21   :  { %p2016_p1 = pnand %p2015_p0, %p2009_p11 }
  0x23   :  { %2019 = shalt.err (!%p2016_p1)
}
  0x24   :  { %s2122_s3 = smov 256   ;;  %s2123_s28 = smov 16  }
  0x25   :  { %48 = dma.hbm_to_vmem [thread:$0]  %s2475_s4, 512, %s43_s20, [#allocation6], %s2122_s3, %s2122_s3, %s2123_s28  }
  0x26   :  { %2108 = dma.done.wait [#allocation3], 22528  }
  0x27   :  { %2109 = vsyncadd [#allocation3], 4294944768 }
  0x28   :  { %2110 = dma.done.wait [#allocation6], 512  }
  0x29   :  { %2111 = vsyncadd [#allocation6], 4294966784  ;;  %v2480_v0 = vmov 0   ;;  %v2200_v1 = vld [vmem:[#allocation2 + $0x4] ss:$8 sps:$4 sm:$0xff]   ;;  %vm118_vm0 = vcmask 523264   ;;  %v68_v55 = vlaneseq }
  0x2a   :  { %154 = vmatprep.mubr.bf16.mxu1 %v2480_v0  ;;  %1805 = vset.pattern.permute.xlu0 %v2480_v0  ;;  %v2202_v2 = vld [vmem:[#allocation2] ss:$8 sps:$4 sm:$0xff]   ;;  %v2205_v3 = vld [vmem:[#allocation2 + $0x14] ss:$8 sps:$4 sm:$0xff]   ;;  %v2208_v4 = vld [vmem:[#allocation2 + $0x10] ss:$8 sps:$4 sm:$0xff]  }
  0x2b   :  { %122 = vmatprep.subr.bf16.mxu1 %v2200_v1  ;;  %v2211_v5 = vld [vmem:[#allocation2 + $0x24] ss:$8 sps:$4 sm:$0xff]   ;;  %v2214_v6 = vld [vmem:[#allocation2 + $0x20] ss:$8 sps:$4 sm:$0xff]   ;;  %v2217_v7 = vld [vmem:[#allocation2 + $0x34] ss:$8 sps:$4 sm:$0xff]  }
  0x2c   :  { %123 = vmatpush1.bf16.msra.mxu1 %v2202_v2  ;;  %v2219_v8 = vld [vmem:[#allocation2 + $0x30] ss:$8 sps:$4 sm:$0xff]   ;;  %v56_v9 = vld [vmem:[%s2471_s0] sm:$0x3]  ;;  %v2226_v10 = vld [vmem:[#allocation2 + $0x44] ss:$8 sps:$4 sm:$0xff]  }
  0x2d   :  { %124 = vmatprep.subr.bf16.mxu1 %v2205_v3  ;;  %v65_v11 = vpack.c.bf16 %v56_v9, %v56_v9  ;;  %v2229_v12 = vld [vmem:[#allocation2 + $0x40] ss:$8 sps:$4 sm:$0xff]   ;;  %v2232_v13 = vld [vmem:[#allocation2 + $0x54] ss:$8 sps:$4 sm:$0xff]   ;;  %v2236_v14 = vld [vmem:[#allocation2 + $0x50] ss:$8 sps:$4 sm:$0xff]  }
  0x2e   :  { %v2239_v15 = vld [vmem:[#allocation2 + $0x64] ss:$8 sps:$4 sm:$0xff]   ;;  %v2242_v16 = vld [vmem:[#allocation2 + $0x60] ss:$8 sps:$4 sm:$0xff]   ;;  %v2245_v17 = vld [vmem:[#allocation2 + $0x74] ss:$8 sps:$4 sm:$0xff]  }
  0x2f   :  { %v2247_v18 = vld [vmem:[#allocation2 + $0x70] ss:$8 sps:$4 sm:$0xff]   ;;  %v2249_v19 = vld [vmem:[#allocation2 + $0x84] ss:$8 sps:$4 sm:$0xff]   ;;  %v2253_v20 = vld [vmem:[#allocation2 + $0x80] ss:$8 sps:$4 sm:$0xff]  }
  0x30   :  { %125 = vmatpush1.bf16.msra.mxu1 %v2208_v4  ;;  %v2255_v21 = vld [vmem:[#allocation2 + $0x94] ss:$8 sps:$4 sm:$0xff]   ;;  %v2259_v22 = vld [vmem:[#allocation2 + $0x90] ss:$8 sps:$4 sm:$0xff]   ;;  %v2261_v23 = vld [vmem:[#allocation2 + $0xa4] ss:$8 sps:$4 sm:$0xff]  }
  0x31   :  { %126 = vmatprep.subr.bf16.mxu1 %v2211_v5  ;;  %v2265_v24 = vld [vmem:[#allocation2 + $0xa0] ss:$8 sps:$4 sm:$0xff]   ;;  %v2267_v25 = vld [vmem:[#allocation2 + $0xb4] ss:$8 sps:$4 sm:$0xff]   ;;  %v2271_v26 = vld [vmem:[#allocation2 + $0xb0] ss:$8 sps:$4 sm:$0xff]  }
  0x32   :  { %v2273_v27 = vld [vmem:[#allocation2 + $0xc4] ss:$8 sps:$4 sm:$0xff]   ;;  %v2277_v28 = vld [vmem:[#allocation2 + $0xc0] ss:$8 sps:$4 sm:$0xff]   ;;  %v2279_v29 = vld [vmem:[#allocation2 + $0xd4] ss:$8 sps:$4 sm:$0xff]  }
  0x33   :  { %v2283_v30 = vld [vmem:[#allocation2 + $0xd0] ss:$8 sps:$4 sm:$0xff]   ;;  %v2285_v31 = vld [vmem:[#allocation2 + $0xe4] ss:$8 sps:$4 sm:$0xff]   ;;  %v2289_v32 = vld [vmem:[#allocation2 + $0xe0] ss:$8 sps:$4 sm:$0xff]  }
  0x34   :  { %127 = vmatpush1.bf16.msra.mxu1 %v2214_v6  ;;  %v2291_v33 = vld [vmem:[#allocation2 + $0xf4] ss:$8 sps:$4 sm:$0xff]   ;;  %v2295_v34 = vld [vmem:[#allocation2 + $0xf0] ss:$8 sps:$4 sm:$0xff]   ;;  %v2297_v35 = vld [vmem:[#allocation2 + $0x104] ss:$8 sps:$4 sm:$0xff]  }
  0x35   :  { %128 = vmatprep.subr.bf16.mxu1 %v2217_v7  ;;  %v2301_v36 = vld [vmem:[#allocation2 + $0x100] ss:$8 sps:$4 sm:$0xff]   ;;  %v2303_v37 = vld [vmem:[#allocation2 + $0x114] ss:$8 sps:$4 sm:$0xff]   ;;  %v2307_v38 = vld [vmem:[#allocation2 + $0x110] ss:$8 sps:$4 sm:$0xff]  }
  0x36   :  { %v2312_v39 = vld [vmem:[#allocation2 + $0x124] ss:$8 sps:$4 sm:$0xff]   ;;  %v2314_v40 = vld [vmem:[#allocation2 + $0x120] ss:$8 sps:$4 sm:$0xff]   ;;  %v2318_v41 = vld [vmem:[#allocation2 + $0x134] ss:$8 sps:$4 sm:$0xff]  }
  0x37   :  { %2485 = vst [vmem:[#allocation18_spill] sm:$0xff] %v2314_v40  ;;  %2486 = vst [vmem:[#allocation19_spill] sm:$0xff] %v2318_v41  ;;  %v2320_v42 = vld [vmem:[#allocation2 + $0x130] ss:$8 sps:$4 sm:$0xff]   ;;  %v1866_v43 = vld [vmem:[#allocation2 + $0x1c0] ss:$8 sps:$4 sm:$0xff]  }
  0x38   :  { %129 = vmatpush1.bf16.msra.mxu1 %v2219_v8  ;;  %2487 = vst [vmem:[#allocation20_spill] sm:$0xff] %v2320_v42  ;;  %v1867_v44 = vld [vmem:[#allocation2 + $0x140] ss:$8 sps:$4 sm:$0xff]   ;;  %v1868_v45 = vld [vmem:[#allocation2 + $0x1d0] ss:$8 sps:$4 sm:$0xff]   ;;  %1706 = vmatprep.subr.bf16.mxu0 %v1866_v43  ;;  %v69_v56 = vshrl.u32 %v68_v55, 7 }
  0x39   :  { %372 = vmatprep.subr.bf16.mxu1 %v2226_v10  ;;  %1707 = vmatpush3.bf16.msra.mxu0 %v1867_v44  ;;  %v1869_v46 = vld [vmem:[#allocation2 + $0x150] ss:$8 sps:$4 sm:$0xff]   ;;  %v1870_v47 = vld [vmem:[#allocation2 + $0x1e0] ss:$8 sps:$4 sm:$0xff]   ;;  %vm1508_vm1 = vcmask 156672   ;;  %vm765_vm2 = vcmask 1041408  }
  0x3a   :  { %1708 = vmatprep.subr.bf16.mxu0 %v1868_v45  ;;  %v1871_v48 = vld [vmem:[#allocation2 + $0x160] ss:$8 sps:$4 sm:$0xff]   ;;  %v1872_v49 = vld [vmem:[#allocation2 + $0x1f0] ss:$8 sps:$4 sm:$0xff]   ;;  %v2324_v57 = vsub.s32 0, %v69_v56  ;;  %v2326_v59 = vsub.s32 1, %v69_v56 }
  0x3b   :  { %1579 = vmatmul.mubr.msk.bf16.vlgmr.msra.gmra.mrb[0].mxu1 %vm118_vm0, %v65_v11  ;;  %v1873_v50 = vld [vmem:[#allocation2 + $0x170] ss:$8 sps:$4 sm:$0xff]   ;;  %v1874_v51 = vld [vmem:[#allocation2 + $0x200] ss:$8 sps:$4 sm:$0xff]   ;;  %vm761_vm3 = vcmask 162816  }
  0x3c   :  { %373 = vmatpush1.bf16.msra.mxu1 %v2229_v12  ;;  %v1875_v52 = vld [vmem:[#allocation2 + $0x180] ss:$8 sps:$4 sm:$0xff]   ;;  %v1876_v53 = vld [vmem:[#allocation2 + $0x210] ss:$8 sps:$4 sm:$0xff]  }
  0x3d   :  { %374 = vmatprep.subr.bf16.mxu1 %v2232_v13  ;;  %1709 = vmatpush3.bf16.msra.mxu0 %v1869_v46  ;;  %v1877_v54 = vld [vmem:[#allocation2 + $0x190] ss:$8 sps:$4 sm:$0xff]   ;;  %v66_v58 = vld [vmem:[#allocation5] ss:$8 sm:$0x3] }
  0x3e   :  { %1710 = vmatprep.subr.bf16.mxu0 %v1870_v47  ;;  %v2329_v60 = vrot.slane %v66_v58, %v2324_v57  ;;  %v2332_v61 = vrot.slane %v66_v58, %v2326_v59  ;;  %v1878_v56 = vld [vmem:[#allocation2 + $0x220] ss:$8 sps:$4 sm:$0xff]  }
  0x3f   :  { %v1879_v58 = vld [vmem:[#allocation2 + $0x1a0] ss:$8 sps:$4 sm:$0xff]  }
  0x40   :  { %375 = vmatpush1.bf16.msra.mxu1 %v2236_v14 }
  0x41   :  { %376 = vmatprep.subr.bf16.mxu1 %v2239_v15  ;;  %1711 = vmatpush3.bf16.msra.mxu0 %v1871_v48 }
  0x42   :  { %1712 = vmatprep.subr.bf16.mxu0 %v1872_v49 }
  0x44   :  { %377 = vmatpush1.bf16.msra.mxu1 %v2242_v16 }
  0x45   :  { %378 = vmatprep.subr.bf16.mxu1 %v2245_v17  ;;  %1713 = vmatpush3.bf16.msra.mxu0 %v1873_v50 }
  0x46   :  { %1714 = vmatprep.subr.bf16.mxu0 %v1874_v51 }
  0x48   :  { %379 = vmatpush1.bf16.msra.mxu1 %v2247_v18 }
  0x49   :  { %380 = vmatprep.subr.bf16.mxu1 %v2249_v19  ;;  %1715 = vmatpush3.bf16.msra.mxu0 %v1875_v52 }
  0x4a   :  { %1716 = vmatprep.subr.bf16.mxu0 %v1876_v53 }
  0x4c   :  { %381 = vmatpush1.bf16.msra.mxu1 %v2253_v20 }
  0x4d   :  { %382 = vmatprep.subr.bf16.mxu1 %v2255_v21  ;;  %1717 = vmatpush3.bf16.msra.mxu0 %v1877_v54 }
  0x4e   :  { %1718 = vmatprep.subr.bf16.mxu0 %v1878_v56 }
  0x50   :  { %383 = vmatpush1.bf16.msra.mxu1 %v2259_v22 }
  0x51   :  { %384 = vmatprep.subr.bf16.mxu1 %v2261_v23  ;;  %1719 = vmatpush3.bf16.msra.mxu0 %v1879_v58 }
  0x54   :  { %385 = vmatpush1.bf16.msra.mxu1 %v2265_v24 }
  0x55   :  { %386 = vmatprep.subr.bf16.mxu1 %v2267_v25 }
  0x58   :  { %387 = vmatpush1.bf16.msra.mxu1 %v2271_v26 }
  0x59   :  { %388 = vmatprep.subr.bf16.mxu1 %v2273_v27 }
  0x5c   :  { %389 = vmatpush1.bf16.msra.mxu1 %v2277_v28 }
  0x5d   :  { %390 = vmatprep.subr.bf16.mxu1 %v2279_v29 }
  0x60   :  { %391 = vmatpush1.bf16.msra.mxu1 %v2283_v30 }
  0x61   :  { %392 = vmatprep.subr.bf16.mxu1 %v2285_v31 }
  0x64   :  { %393 = vmatpush1.bf16.msra.mxu1 %v2289_v32 }
  0x65   :  { %394 = vmatprep.subr.bf16.mxu1 %v2291_v33 }
  0x68   :  { %395 = vmatpush1.bf16.msra.mxu1 %v2295_v34 }
  0x69   :  { %396 = vmatprep.subr.bf16.mxu1 %v2297_v35 }
  0x6c   :  { %397 = vmatpush1.bf16.msra.mxu1 %v2301_v36 }
  0x6d   :  { %398 = vmatprep.subr.bf16.mxu1 %v2303_v37 }
  0x70   :  { %399 = vmatpush1.bf16.msra.mxu1 %v2307_v38 }
  0x71   :  { %400 = vmatprep.subr.bf16.mxu1 %v2312_v39 }
  0x74   :  { %401 = vmatpush1.bf16.msra.mxu1 %v2314_v40 }
  0x75   :  { %402 = vmatprep.subr.bf16.mxu1 %v2318_v41 }
  0x78   :  { %403 = vmatpush1.bf16.msra.mxu1 %v2320_v42 }
  0x79   :  { %1728 = vmatprep.subr.bf16.mxu1 %v1866_v43 }
 0x10e   :  { %v156_v62 = vpop.f32.mrb[0].mxu1 }
 0x10f   :  { %v157_v63 = vadd.f32 %v156_v62, %v2329_v60  ;;  %v158_v9 = vpop.f32.mrb[1].mxu1  ;;  %v586_v62 = vld [vmem:[%s2472_s1] sm:$0x3] }
 0x110   :  { %v159_v11 = vadd.f32 %v158_v9, %v2332_v61  ;;  %v160_v43 = vpop.f32.mrb[2].mxu1  ;;  %v1902_v9 = vld [vmem:[#allocation2 + $0x3d0] ss:$8 sps:$4 sm:$0xff]  }
 0x111   :  { %v163_v0 = vmax.f32 %v157_v63, 0.0  ;;  %v161_v55 = vpop.f32.mrb[3].mxu1  ;;  %v587_v63 = vpack.c.bf16 %v586_v62, %v586_v62  ;;  %v1905_v43 = vld [vmem:[#allocation2 + $0x3e0] ss:$8 sps:$4 sm:$0xff]  }
 0x112   :  { %v164_v42 = vmax.f32 %v159_v11, 0.0  ;;  %v1907_v11 = vld [vmem:[#allocation2 + $0x3e4] ss:$8 sps:$4 sm:$0xff]   ;;  %v1910_v55 = vld [vmem:[#allocation2 + $0x3f4] ss:$8 sps:$4 sm:$0xff]  }
 0x113   :  { %v197_v40 = vpack.c.bf16 %v163_v0, %v163_v0  ;;  %v1880_v0 = vld [vmem:[#allocation2 + $0x230] ss:$8 sps:$4 sm:$0xff]   ;;  %v1932_v62 = vld [vmem:[#allocation2 + $0x460] ss:$8 sps:$4 sm:$0xff]  }
 0x114   :  { %v198_v41 = vpack.c.bf16 %v164_v42, %v164_v42  ;;  %1720 = vmatprep.subr.bf16.mxu0 %v1880_v0 }
 0x116   :  { %404 = vmatprep.mubr.bf16.mxu1 %v198_v41  ;;  %v1881_v41 = vld [vmem:[#allocation2 + $0x1b0] ss:$8 sps:$4 sm:$0xff]  }
 0x117   :  { %405 = vmatmul.mubr.bf16.vlgmr.msra.gmra.mrb[4].mxu1 %v197_v40  ;;  %1721 = vmatpush3.bf16.msra.mxu0 %v1881_v41  ;;  %v200_v40 = vld [vmem:[#allocation5 + $0x1] ss:$8 sm:$0x3] }
 0x118   :  { %1729 = vmatpush3.bf16.msra.mxu1 %v1867_v44  ;;  %591 = vmatprep.subr.bf16.mxu0 %v2200_v1  ;;  %v2338_v42 = vrot.slane %v200_v40, %v2324_v57  ;;  %v2341_v44 = vrot.slane %v200_v40, %v2326_v59  ;;  %v2488_v1 = vmov 0   ;;  %v1914_v40 = vld [vmem:[#allocation2 + $0x410] ss:$8 sps:$4 sm:$0xff]  }
 0x119   :  { %1730 = vmatprep.subr.bf16.mxu1 %v1868_v45 }
 0x11c   :  { %1731 = vmatpush3.bf16.msra.mxu1 %v1869_v46 }
 0x11d   :  { %1732 = vmatprep.subr.bf16.mxu1 %v1870_v47 }
 0x120   :  { %1733 = vmatpush3.bf16.msra.mxu1 %v1871_v48 }
 0x121   :  { %1734 = vmatprep.subr.bf16.mxu1 %v1872_v49 }
 0x124   :  { %1735 = vmatpush3.bf16.msra.mxu1 %v1873_v50 }
 0x125   :  { %1736 = vmatprep.subr.bf16.mxu1 %v1874_v51 }
 0x128   :  { %1737 = vmatpush3.bf16.msra.mxu1 %v1875_v52 }
 0x129   :  { %1738 = vmatprep.subr.bf16.mxu1 %v1876_v53 }
 0x12c   :  { %1739 = vmatpush3.bf16.msra.mxu1 %v1877_v54 }
 0x12d   :  { %1740 = vmatprep.subr.bf16.mxu1 %v1878_v56  ;;  %v1908_v56 = vld [vmem:[#allocation2 + $0x3f0] ss:$8 sps:$4 sm:$0xff]  }
 0x130   :  { %1741 = vmatpush3.bf16.msra.mxu1 %v1879_v58  ;;  %v1913_v58 = vld [vmem:[#allocation2 + $0x404] ss:$8 sps:$4 sm:$0xff]  }
 0x131   :  { %1742 = vmatprep.subr.bf16.mxu1 %v1880_v0  ;;  %v1911_v0 = vld [vmem:[#allocation2 + $0x400] ss:$8 sps:$4 sm:$0xff]  }
 0x134   :  { %1743 = vmatpush3.bf16.msra.mxu1 %v1881_v41  ;;  %v1916_v41 = vld [vmem:[#allocation2 + $0x414] ss:$8 sps:$4 sm:$0xff]  }
 0x1ea   :  { %v406_v45 = vpop.f32.mrb[4].mxu1 }
 0x1eb   :  { %v407_v46 = vadd.f32 %v406_v45, %v2338_v42  ;;  %v408_v47 = vpop.f32.mrb[5].mxu1  ;;  %v1919_v45 = vld [vmem:[#allocation2 + $0x424] ss:$8 sps:$4 sm:$0xff]  }
 0x1ec   :  { %v409_v48 = vadd.f32 %v408_v47, %v2341_v44  ;;  %v410_v49 = vpop.f32.mrb[6].mxu1  ;;  %v1922_v47 = vld [vmem:[#allocation2 + $0x434] ss:$8 sps:$4 sm:$0xff]  }
 0x1ed   :  { %v413_v50 = vmax.f32 %v407_v46, 0.0  ;;  %v411_v51 = vpop.f32.mrb[7].mxu1  ;;  %v1917_v46 = vld [vmem:[#allocation2 + $0x420] ss:$8 sps:$4 sm:$0xff]   ;;  %v1925_v49 = vld [vmem:[#allocation2 + $0x444] ss:$8 sps:$4 sm:$0xff]  }
 0x1ee   :  { %v414_v52 = vmax.f32 %v409_v48, 0.0  ;;  %v1920_v48 = vld [vmem:[#allocation2 + $0x430] ss:$8 sps:$4 sm:$0xff]   ;;  %v1928_v51 = vld [vmem:[#allocation2 + $0x454] ss:$8 sps:$4 sm:$0xff]  }
 0x1ef   :  { %v447_v54 = vpack.c.bf16 %v413_v50, %v413_v50  ;;  %v1923_v50 = vld [vmem:[#allocation2 + $0x440] ss:$8 sps:$4 sm:$0xff]  }
 0x1f0   :  { %v448_v53 = vpack.c.bf16 %v414_v52, %v414_v52  ;;  %v1926_v52 = vld [vmem:[#allocation2 + $0x450] ss:$8 sps:$4 sm:$0xff]  }
 0x1f2   :  { %578 = vmatprep.mubr.bf16.mxu0 %v448_v53  ;;  %v1931_v53 = vld [vmem:[#allocation2 + $0x244] ss:$8 sps:$4 sm:$0xff]  }
 0x1f3   :  { %579 = vmatmul.mubr.bf16.vlgmr.msra.gmra.mrb[0].mxu0 %v447_v54  ;;  %v1934_v54 = vld [vmem:[#allocation2 + $0x464] ss:$8 sps:$4 sm:$0xff]   ;;  %772 = vmatprep.subr.bf16.mxu1 %v1931_v53 }
 0x1f4   :  { %592 = vmatpush1.bf16.msra.mxu0 %v2202_v2  ;;  %623 = vmatprep.mubr.bf16.mxu0 %v2488_v1  ;;  %v2489_v2 = vld [vmem:[#allocation18_spill] sm:$0xff] }
 0x1f5   :  { %593 = vmatprep.subr.bf16.mxu0 %v2205_v3  ;;  %v2490_v3 = vld [vmem:[#allocation19_spill] sm:$0xff] }
 0x1f8   :  { %594 = vmatpush1.bf16.msra.mxu0 %v2208_v4  ;;  %v2491_v4 = vld [vmem:[#allocation20_spill] sm:$0xff] }
 0x1f9   :  { %595 = vmatprep.subr.bf16.mxu0 %v2211_v5  ;;  %v1884_v5 = vld [vmem:[#allocation2 + $0x364] ss:$8 sps:$4 sm:$0xff]  }
 0x1fc   :  { %596 = vmatpush1.bf16.msra.mxu0 %v2214_v6 }
 0x1fd   :  { %597 = vmatprep.subr.bf16.mxu0 %v2217_v7  ;;  %v2389_v7 = vld [vmem:[#allocation5 + $0x2] ss:$0 sm:$0xff] }
 0x200   :  { %598 = vmatpush1.bf16.msra.mxu0 %v2219_v8 }
 0x201   :  { %636 = vmatprep.subr.bf16.mxu0 %v2226_v10 }
 0x203   :  { %1628 = vmatmul.mubr.msk.bf16.vlgmr.msra.gmra.mrb[4].mxu0 %vm118_vm0, %v587_v63  ;;  %v1939_v63 = vld [vmem:[#allocation2 + $0x474] ss:$8 sps:$4 sm:$0xff]  }
 0x204   :  { %637 = vmatpush1.bf16.msra.mxu0 %v2229_v12 }
 0x205   :  { %638 = vmatprep.subr.bf16.mxu0 %v2232_v13 }
 0x208   :  { %639 = vmatpush1.bf16.msra.mxu0 %v2236_v14 }
 0x209   :  { %640 = vmatprep.subr.bf16.mxu0 %v2239_v15 }
 0x20c   :  { %641 = vmatpush1.bf16.msra.mxu0 %v2242_v16 }
 0x20d   :  { %642 = vmatprep.subr.bf16.mxu0 %v2245_v17 }
 0x210   :  { %643 = vmatpush1.bf16.msra.mxu0 %v2247_v18 }
 0x211   :  { %644 = vmatprep.subr.bf16.mxu0 %v2249_v19 }
 0x214   :  { %645 = vmatpush1.bf16.msra.mxu0 %v2253_v20 }
 0x215   :  { %646 = vmatprep.subr.bf16.mxu0 %v2255_v21 }
 0x218   :  { %647 = vmatpush1.bf16.msra.mxu0 %v2259_v22 }
 0x219   :  { %648 = vmatprep.subr.bf16.mxu0 %v2261_v23  ;;  %v1003_v23 = vld [vmem:[#allocation2 + $0x370] sm:$0x33] }
 0x21c   :  { %649 = vmatpush1.bf16.msra.mxu0 %v2265_v24 }
 0x21d   :  { %650 = vmatprep.subr.bf16.mxu0 %v2267_v25  ;;  %v1882_v25 = vld [vmem:[#allocation2 + $0x360] ss:$8 sps:$4 sm:$0xff]  }
 0x220   :  { %651 = vmatpush1.bf16.msra.mxu0 %v2271_v26 }
 0x221   :  { %652 = vmatprep.subr.bf16.mxu0 %v2273_v27  ;;  %v1654_v27 = vcombine.high %v1003_v23, %v1003_v23 }
 0x224   :  { %653 = vmatpush1.bf16.msra.mxu0 %v2277_v28  ;;  %v1653_v28 = vcombine.low %v1003_v23, %v1003_v23 }
 0x225   :  { %654 = vmatprep.subr.bf16.mxu0 %v2279_v29 }
 0x226   :  { %v1033_v29 = vsel %vm765_vm2, %v1653_v28, 0 }
 0x228   :  { %655 = vmatpush1.bf16.msra.mxu0 %v2283_v30  ;;  %v1889_v30 = vld [vmem:[#allocation2 + $0x384] ss:$8 sps:$4 sm:$0xff]  }
 0x229   :  { %656 = vmatprep.subr.bf16.mxu0 %v2285_v31  ;;  %v1887_v31 = vld [vmem:[#allocation2 + $0x380] ss:$8 sps:$4 sm:$0xff]  }
 0x22c   :  { %657 = vmatpush1.bf16.msra.mxu0 %v2289_v32 }
 0x22d   :  { %658 = vmatprep.subr.bf16.mxu0 %v2291_v33  ;;  %v1892_v33 = vld [vmem:[#allocation2 + $0x394] ss:$8 sps:$4 sm:$0xff]  }
 0x230   :  { %659 = vmatpush1.bf16.msra.mxu0 %v2295_v34  ;;  %v1890_v34 = vld [vmem:[#allocation2 + $0x390] ss:$8 sps:$4 sm:$0xff]  }
 0x231   :  { %660 = vmatprep.subr.bf16.mxu0 %v2297_v35  ;;  %v1895_v35 = vld [vmem:[#allocation2 + $0x3a4] ss:$8 sps:$4 sm:$0xff]  }
 0x234   :  { %661 = vmatpush1.bf16.msra.mxu0 %v2301_v36  ;;  %v1893_v36 = vld [vmem:[#allocation2 + $0x3a0] ss:$8 sps:$4 sm:$0xff]  }
 0x235   :  { %662 = vmatprep.subr.bf16.mxu0 %v2303_v37  ;;  %v1898_v37 = vld [vmem:[#allocation2 + $0x3b4] ss:$8 sps:$4 sm:$0xff]  }
 0x238   :  { %663 = vmatpush1.bf16.msra.mxu0 %v2307_v38  ;;  %v1896_v38 = vld [vmem:[#allocation2 + $0x3b0] ss:$8 sps:$4 sm:$0xff]  }
 0x239   :  { %664 = vmatprep.subr.bf16.mxu0 %v2312_v39  ;;  %v1901_v39 = vld [vmem:[#allocation2 + $0x3c4] ss:$8 sps:$4 sm:$0xff]  }
 0x23c   :  { %665 = vmatpush1.bf16.msra.mxu0 %v2489_v2  ;;  %v1937_v2 = vld [vmem:[#allocation2 + $0x470] ss:$8 sps:$4 sm:$0xff]  }
 0x23d   :  { %666 = vmatprep.subr.bf16.mxu0 %v2490_v3  ;;  %v725_v3 = vld [vmem:[%s2473_s2] sm:$0x3]  ;;  %s2125_s2 = smov [#allocation7]  }
 0x23e   :  { %730 = vperm.xlu0 %1805, %v725_v3   ;;  %s1520_s13 = sshll.u32 %s2125_s2, 4  ;;  %s1521_s13 = int_to_ptr.vmem [resolvable:$true] %s1520_s13 }
 0x23f   :  { %s2020_s14 = scalar_lea.vmem %s1521_s13, 32  ;;  %p2025_p3 = scmp.lt.s32.totalorder %s1521_s13, %s1521_s13 }
 0x240   :  { %667 = vmatpush1.bf16.msra.mxu0 %v2491_v4  ;;  %p2021_p2 = scmp.ne.s32.totalorder %s1521_s13, %s2020_s14  ;;  %p2026_p4 = scmp.lt.s32.totalorder %s2020_s14, %s2020_s14 }
 0x241   :  { %1038 = vmatprep.subr.bf16.mxu0 %v1884_v5 }
 0x242   :  { %p2027_p5 = por %p2026_p4, %p2025_p3 }
 0x244   :  { %p2028_p6 = pnand %p2027_p5, %p2021_p2 }
 0x2c6   :  { %v1722_v6 = vpop.f32.mrb[0].mxu0 }
 0x2c7   :  { %v1723_v8 = vpop.f32.mrb[1].mxu0 }
 0x2c8   :  { %v1724_v10 = vadd.f32 %v1723_v8, %v1722_v6  ;;  %v1725_v12 = vpop.f32.mrb[2].mxu0 }
 0x2c9   :  { %v1726_v13 = vpop.f32.mrb[3].mxu0  ;;  %v1005_v12 = vld [vmem:[#allocation5 + $0x5] ss:$8 sm:$0x3] }
 0x2ca   :  { %v581_v14 = vadd.f32 %v1724_v10, %v2389_v7 }
 0x2cc   :  { %1509 = vst.msk [vmem:[#allocation7] sm:$0x3] %vm1508_vm1, %v581_v14  ;;  %v2398_v32 = vpack.c.bf16 %v581_v14, %v581_v14 }
 0x2d6   :  { %v625_v15 = vpop.f32.mrb[4].mxu0 }
 0x2d7   :  { %v626_v16 = vadd.f32 %v625_v15, %v2329_v60  ;;  %v627_v17 = vpop.f32.mrb[5].mxu0  ;;  %v1899_v60 = vld [vmem:[#allocation2 + $0x3c0] ss:$8 sps:$4 sm:$0xff]  }
 0x2d8   :  { %v628_v18 = vadd.f32 %v627_v17, %v2332_v61  ;;  %v629_v19 = vpop.f32.mrb[6].mxu0  ;;  %v1904_v61 = vld [vmem:[#allocation2 + $0x3d4] ss:$8 sps:$4 sm:$0xff]   ;;  %v1010_v17 = vrot.slane %v1005_v12, %v2324_v57 }
 0x2d9   :  { %v632_v20 = vmax.f32 %v626_v16, 0.0  ;;  %v630_v21 = vpop.f32.mrb[7].mxu0  ;;  %v723_v16 = vld [vmem:[#allocation2 + $0x250] sm:$0x33]  ;;  %v1929_v19 = vld [vmem:[#allocation2 + $0x240] ss:$8 sps:$4 sm:$0xff]  }
 0x2da   :  { %v633_v22 = vmax.f32 %v628_v18, 0.0  ;;  %v1631_v23 = vcombine.low %v723_v16, %v723_v16 }
 0x2db   :  { %v634_v26 = vpack.c.bf16 %v632_v20, %v632_v20  ;;  %v1014_v20 = vrot.slane %v1005_v12, %v2326_v59 }
 0x2dc   :  { %v635_v24 = vpack.c.bf16 %v633_v22, %v633_v22  ;;  %v1632_v22 = vcombine.high %v723_v16, %v723_v16 }
 0x2de   :  { %668 = vmatprep.mubr.bf16.mxu0 %v635_v24 }
 0x2df   :  { %669 = vmatmul.mubr.bf16.vlgmr.msra.gmra.mrb[8].mxu0 %v634_v26 }
 0x2e0   :  { %1039 = vmatpush1.bf16.msra.mxu0 %v1882_v25  ;;  %1070 = vmatprep.mubr.bf16.mxu0 %v2488_v1 }
 0x2e1   :  { %1655 = vmatprep.subr.msk.bf16.mxu0 %vm765_vm2, %v1654_v27 }
 0x2e4   :  { %1041 = vmatpush1.bf16.msra.mxu0 %v1033_v29  ;;  %v767_v29 = vsel %vm765_vm2, %v1631_v23, 0 }
 0x2e5   :  { %1288 = vmatprep.subr.bf16.mxu0 %v1889_v30  ;;  %v1940_v30 = vld [vmem:[#allocation2 + $0x2e0] ss:$8 sps:$4 sm:$0xff]  }
 0x2e7   :  { %1656 = vmatmul.mubr.msk.bf16.vlgmr.msra.gmra.mrb[12].mxu0 %vm761_vm3, %v2398_v32 }
 0x2e8   :  { %1289 = vmatpush1.bf16.msra.mxu0 %v1887_v31 }
 0x2e9   :  { %1290 = vmatprep.subr.bf16.mxu0 %v1892_v33 }
 0x2ec   :  { %1291 = vmatpush1.bf16.msra.mxu0 %v1890_v34  ;;  %v1941_v34 = vld [vmem:[#allocation2 + $0x260] ss:$8 sps:$4 sm:$0xff]  }
 0x2ed   :  { %1292 = vmatprep.subr.bf16.mxu0 %v1895_v35 }
 0x2f0   :  { %1293 = vmatpush1.bf16.msra.mxu0 %v1893_v36  ;;  %v1942_v36 = vld [vmem:[#allocation2 + $0x2f0] ss:$8 sps:$4 sm:$0xff]  }
 0x2f1   :  { %1294 = vmatprep.subr.bf16.mxu0 %v1898_v37  ;;  %v1944_v37 = vld [vmem:[#allocation2 + $0x300] ss:$8 sps:$4 sm:$0xff]  }
 0x2f4   :  { %1295 = vmatpush1.bf16.msra.mxu0 %v1896_v38  ;;  %v1945_v38 = vld [vmem:[#allocation2 + $0x280] ss:$8 sps:$4 sm:$0xff]  }
 0x2f5   :  { %1296 = vmatprep.subr.bf16.mxu0 %v1901_v39  ;;  %v1946_v39 = vld [vmem:[#allocation2 + $0x310] ss:$8 sps:$4 sm:$0xff]  }
 0x2f8   :  { %1297 = vmatpush1.bf16.msra.mxu0 %v1899_v60  ;;  %v1947_v60 = vld [vmem:[#allocation2 + $0x290] ss:$8 sps:$4 sm:$0xff]  }
 0x2f9   :  { %1298 = vmatprep.subr.bf16.mxu0 %v1904_v61  ;;  %v1948_v61 = vld [vmem:[#allocation2 + $0x320] ss:$8 sps:$4 sm:$0xff]  }
 0x2fc   :  { %1299 = vmatpush1.bf16.msra.mxu0 %v1902_v9  ;;  %v1949_v9 = vld [vmem:[#allocation2 + $0x2a0] ss:$8 sps:$4 sm:$0xff]  }
 0x2fd   :  { %1300 = vmatprep.subr.bf16.mxu0 %v1907_v11  ;;  %v1950_v11 = vld [vmem:[#allocation2 + $0x330] ss:$8 sps:$4 sm:$0xff]  }
 0x300   :  { %1301 = vmatpush1.bf16.msra.mxu0 %v1905_v43  ;;  %v1951_v43 = vld [vmem:[#allocation2 + $0x2b0] ss:$8 sps:$4 sm:$0xff]  }
 0x301   :  { %1302 = vmatprep.subr.bf16.mxu0 %v1910_v55  ;;  %v1953_v55 = vld [vmem:[#allocation2 + $0x2c0] ss:$8 sps:$4 sm:$0xff]  }
 0x304   :  { %1303 = vmatpush1.bf16.msra.mxu0 %v1908_v56  ;;  %v1954_v56 = vld [vmem:[#allocation2 + $0x350] ss:$8 sps:$4 sm:$0xff]  }
 0x305   :  { %1304 = vmatprep.subr.bf16.mxu0 %v1913_v58  ;;  %v1955_v58 = vld [vmem:[#allocation2 + $0x2d0] ss:$8 sps:$4 sm:$0xff]  }
 0x308   :  { %1305 = vmatpush1.bf16.msra.mxu0 %v1911_v0  ;;  %v1956_v0 = vld [vmem:[#allocation2 + $0x500] ss:$8 sps:$4 sm:$0xff]  }
 0x309   :  { %1306 = vmatprep.subr.bf16.mxu0 %v1916_v41  ;;  %v727_v41 = vld [vmem:[#allocation5 + $0x10] ss:$8 sm:$0x3] }
 0x30c   :  { %1307 = vmatpush1.bf16.msra.mxu0 %v1914_v40 }
 0x30d   :  { %1308 = vmatprep.subr.bf16.mxu0 %v1919_v45 }
 0x310   :  { %1309 = vmatpush1.bf16.msra.mxu0 %v1917_v46  ;;  %v737_v46 = vrot.slane %v727_v41, %v2324_v57 }
 0x311   :  { %1310 = vmatprep.subr.bf16.mxu0 %v1922_v47 }
 0x314   :  { %1311 = vmatpush1.bf16.msra.mxu0 %v1920_v48 }
 0x315   :  { %1312 = vmatprep.subr.bf16.mxu0 %v1925_v49  ;;  %v741_v49 = vrot.slane %v727_v41, %v2326_v59 }
 0x318   :  { %1313 = vmatpush1.bf16.msra.mxu0 %v1923_v50  ;;  %v731_v50 = vpop.permute.xlu0 %730 }
 0x319   :  { %1314 = vmatprep.subr.bf16.mxu0 %v1928_v51 }
 0x31c   :  { %1315 = vmatpush1.bf16.msra.mxu0 %v1926_v52  ;;  %v1116_v52 = vld [vmem:[#allocation5 + $0x6] ss:$8 sm:$0x3] }
 0x31d   :  { %1316 = vmatprep.subr.bf16.mxu0 %v1934_v54  ;;  %v814_v54 = vld [vmem:[#allocation5 + $0x3] ss:$8 sm:$0x3] }
 0x31e   :  { %v819_v3 = vrot.slane %v814_v54, %v2324_v57 }
 0x320   :  { %1317 = vmatpush1.bf16.msra.mxu0 %v1932_v62  ;;  %v744_v62 = vmul.f32 %v737_v46, %v731_v50 }
 0x321   :  { %1318 = vmatprep.subr.bf16.mxu0 %v1939_v63  ;;  %v745_v63 = vmul.f32 %v741_v49, %v731_v50 }
 0x324   :  { %1319 = vmatpush1.bf16.msra.mxu0 %v1937_v2  ;;  %v1125_v2 = vrot.slane %v1116_v52, %v2326_v59 }
 0x3b2   :  { %v670_v4 = vpop.f32.mrb[8].mxu0 }
 0x3b3   :  { %v671_v5 = vadd.f32 %v670_v4, %v2338_v42  ;;  %v672_v6 = vpop.f32.mrb[9].mxu0 }
 0x3b4   :  { %v673_v8 = vadd.f32 %v672_v6, %v2341_v44  ;;  %v674_v10 = vpop.f32.mrb[10].mxu0  ;;  %v823_v6 = vrot.slane %v814_v54, %v2326_v59  ;;  %v1959_v59 = vld [vmem:[#allocation2 + $0x490] ss:$8 sps:$4 sm:$0xff]  }
 0x3b5   :  { %v677_v13 = vmax.f32 %v671_v5, 0.0  ;;  %v675_v14 = vpop.f32.mrb[11].mxu0 }
 0x3b6   :  { %v678_v15 = vmax.f32 %v673_v8, 0.0 }
 0x3b7   :  { %v679_v21 = vpack.c.bf16 %v677_v13, %v677_v13 }
 0x3b8   :  { %v680_v18 = vpack.c.bf16 %v678_v15, %v678_v15 }
 0x3ba   :  { %713 = vmatprep.mubr.bf16.mxu1 %v680_v18  ;;  %v1072_v42 = vpop.f32.mrb[12].mxu0 }
 0x3bb   :  { %v1073_v24 = vadd.f32 %v1072_v42, %v1010_v17  ;;  %714 = vmatmul.mubr.bf16.vlgmr.msra.gmra.mrb[8].mxu1 %v679_v21  ;;  %v1074_v44 = vpop.f32.mrb[13].mxu0  ;;  %v1957_v42 = vld [vmem:[#allocation2 + $0x480] ss:$8 sps:$4 sm:$0xff]  }
 0x3bc   :  { %773 = vmatpush1.bf16.msra.mxu1 %v1929_v19  ;;  %v1075_v25 = vadd.f32 %v1074_v44, %v1014_v20  ;;  %v1076_v26 = vpop.f32.mrb[14].mxu0  ;;  %804 = vmatprep.mubr.bf16.mxu1 %v2488_v1  ;;  %v1943_v1 = vld [vmem:[#allocation2 + $0x270] ss:$8 sps:$4 sm:$0xff]  }
 0x3bd   :  { %v1079_v27 = vmax.f32 %v1073_v24, 0.0  ;;  %v1077_v28 = vpop.f32.mrb[15].mxu0  ;;  %1633 = vmatprep.subr.msk.bf16.mxu1 %vm765_vm2, %v1632_v22  ;;  %v1958_v44 = vld [vmem:[#allocation2 + $0x510] ss:$8 sps:$4 sm:$0xff]   ;;  %v1960_v26 = vld [vmem:[#allocation2 + $0x520] ss:$8 sps:$4 sm:$0xff]  }
 0x3be   :  { %v1080_v31 = vmax.f32 %v1075_v25, 0.0  ;;  %v1962_v28 = vld [vmem:[#allocation2 + $0x530] ss:$8 sps:$4 sm:$0xff]  }
 0x3bf   :  { %v1113_v35 = vpack.c.bf16 %v1079_v27, %v1079_v27  ;;  %v1961_v27 = vld [vmem:[#allocation2 + $0x4a0] ss:$8 sps:$4 sm:$0xff]  }
 0x3c0   :  { %v1114_v33 = vpack.c.bf16 %v1080_v31, %v1080_v31  ;;  %775 = vmatpush1.bf16.msra.mxu1 %v767_v29  ;;  %v1963_v29 = vld [vmem:[#allocation2 + $0x4b0] ss:$8 sps:$4 sm:$0xff]   ;;  %v1965_v31 = vld [vmem:[#allocation2 + $0x4c0] ss:$8 sps:$4 sm:$0xff]  }
 0x3c1   :  { %1750 = vmatprep.subr.bf16.mxu1 %v1940_v30  ;;  %v1964_v30 = vld [vmem:[#allocation2 + $0x540] ss:$8 sps:$4 sm:$0xff]  }
 0x3c2   :  { %1320 = vmatprep.mubr.bf16.mxu0 %v1114_v33  ;;  %v1966_v33 = vld [vmem:[#allocation2 + $0x550] ss:$8 sps:$4 sm:$0xff]  }
 0x3c3   :  { %1634 = vmatmul.mubr.msk.bf16.vlgmr.msra.gmra.mrb[12].mxu1 %vm761_vm3, %v2398_v32  ;;  %1321 = vmatmul.mubr.bf16.vlgmr.msra.gmra.mrb[16].mxu0 %v1113_v35  ;;  %v1952_v32 = vld [vmem:[#allocation2 + $0x340] ss:$8 sps:$4 sm:$0xff]   ;;  %v1121_v35 = vrot.slane %v1116_v52, %v2324_v57 }
 0x3c4   :  { %1751 = vmatpush3.bf16.msra.mxu1 %v1941_v34  ;;  %v1967_v34 = vld [vmem:[#allocation2 + $0x4d0] ss:$8 sps:$4 sm:$0xff]  }
 0x3c5   :  { %1752 = vmatprep.subr.bf16.mxu1 %v1942_v36  ;;  %v1968_v36 = vld [vmem:[#allocation2 + $0x560] ss:$8 sps:$4 sm:$0xff]  }
 0x3c8   :  { %1753 = vmatpush3.bf16.msra.mxu1 %v1943_v1  ;;  %v1969_v1 = vld [vmem:[#allocation2 + $0x4e0] ss:$8 sps:$4 sm:$0xff]  }
 0x3c9   :  { %1754 = vmatprep.subr.bf16.mxu1 %v1944_v37 }
 0x3cc   :  { %1755 = vmatpush3.bf16.msra.mxu1 %v1945_v38  ;;  %v1970_v38 = vld [vmem:[#allocation2 + $0x570] ss:$8 sps:$4 sm:$0xff]  }
 0x3cd   :  { %1756 = vmatprep.subr.bf16.mxu1 %v1946_v39  ;;  %v1971_v39 = vld [vmem:[#allocation2 + $0x4f0] ss:$8 sps:$4 sm:$0xff]  }
 0x3d0   :  { %1757 = vmatpush3.bf16.msra.mxu1 %v1947_v60 }
 0x3d1   :  { %1758 = vmatprep.subr.bf16.mxu1 %v1948_v61 }
 0x3d4   :  { %1759 = vmatpush3.bf16.msra.mxu1 %v1949_v9 }
 0x3d5   :  { %1760 = vmatprep.subr.bf16.mxu1 %v1950_v11 }
 0x3d8   :  { %1761 = vmatpush3.bf16.msra.mxu1 %v1951_v43 }
 0x3d9   :  { %1762 = vmatprep.subr.bf16.mxu1 %v1952_v32 }
 0x3dc   :  { %1763 = vmatpush3.bf16.msra.mxu1 %v1953_v55 }
 0x3dd   :  { %1764 = vmatprep.subr.bf16.mxu1 %v1954_v56 }
 0x3e0   :  { %1765 = vmatpush3.bf16.msra.mxu1 %v1955_v58 }
 0x3e1   :  { %1772 = vmatprep.subr.bf16.mxu1 %v1956_v0 }
 0x48e   :  { %v1744_v40 = vpop.f32.mrb[8].mxu1 }
 0x48f   :  { %v1745_v45 = vpop.f32.mrb[9].mxu1 }
 0x490   :  { %v1746_v47 = vadd.f32 %v1745_v45, %v1744_v40  ;;  %v1747_v48 = vpop.f32.mrb[10].mxu1 }
 0x491   :  { %v1748_v51 = vpop.f32.mrb[11].mxu1 }
 0x492   :  { %v716_v53 = vadd.f32 %v1746_v47, %v2389_v7 }
 0x494   :  { %1513 = vst.msk [vmem:[#allocation11] sm:$0x3] %vm1508_vm1, %v716_v53 }
 0x496   :  { %v806_v4 = vpop.f32.mrb[12].mxu1  ;;  %v1322_v5 = vpop.f32.mrb[16].mxu0 }
 0x497   :  { %v807_v8 = vadd.f32 %v806_v4, %v744_v62  ;;  %v808_v10 = vpop.f32.mrb[13].mxu1  ;;  %v1324_v12 = vpop.f32.mrb[17].mxu0  ;;  %v1323_v37 = vadd.f32 %v1322_v5, %v1121_v35 }
 0x498   :  { %v809_v13 = vadd.f32 %v808_v10, %v745_v63  ;;  %v1325_v14 = vadd.f32 %v1324_v12, %v1125_v2  ;;  %v810_v15 = vpop.f32.mrb[14].mxu1  ;;  %v1326_v7 = vpop.f32.mrb[18].mxu0 }
 0x499   :  { %v826_v16 = vadd.f32 %v819_v3, %v807_v8  ;;  %v811_v17 = vpop.f32.mrb[15].mxu1  ;;  %v1327_v18 = vpop.f32.mrb[19].mxu0  ;;  %v1329_v60 = vmax.f32 %v1323_v37, 0.0 }
 0x49a   :  { %v827_v19 = vadd.f32 %v823_v6, %v809_v13  ;;  %v1330_v22 = vmax.f32 %v1325_v14, 0.0 }
 0x49b   :  { %v828_v20 = vmax.f32 %v826_v16, 0.0  ;;  %v1363_v61 = vpack.c.bf16 %v1329_v60, %v1329_v60 }
 0x49c   :  { %v829_v21 = vmax.f32 %v827_v19, 0.0  ;;  %v1364_v25 = vpack.c.bf16 %v1330_v22, %v1330_v22 }
 0x49d   :  { %v862_v24 = vpack.c.bf16 %v828_v20, %v828_v20 }
 0x49e   :  { %v863_v23 = vpack.c.bf16 %v829_v21, %v829_v21 }
 0x4a0   :  { %993 = vmatprep.mubr.bf16.mxu1 %v863_v23 }
 0x4a1   :  { %994 = vmatmul.mubr.bf16.vlgmr.msra.gmra.mrb[16].mxu1 %v862_v24 }
 0x4a2   :  { %1773 = vmatpush3.bf16.msra.mxu1 %v1957_v42  ;;  %1494 = vmatprep.mubr.bf16.mxu1 %v1364_v25 }
 0x4a3   :  { %1774 = vmatprep.subr.bf16.mxu1 %v1958_v44 }
 0x4a6   :  { %1775 = vmatpush3.bf16.msra.mxu1 %v1959_v59 }
 0x4a7   :  { %1776 = vmatprep.subr.bf16.mxu1 %v1960_v26 }
 0x4aa   :  { %1777 = vmatpush3.bf16.msra.mxu1 %v1961_v27 }
 0x4ab   :  { %1778 = vmatprep.subr.bf16.mxu1 %v1962_v28 }
 0x4ae   :  { %1779 = vmatpush3.bf16.msra.mxu1 %v1963_v29 }
 0x4af   :  { %1780 = vmatprep.subr.bf16.mxu1 %v1964_v30 }
 0x4b2   :  { %1781 = vmatpush3.bf16.msra.mxu1 %v1965_v31 }
 0x4b3   :  { %1782 = vmatprep.subr.bf16.mxu1 %v1966_v33 }
 0x4b6   :  { %1783 = vmatpush3.bf16.msra.mxu1 %v1967_v34 }
 0x4b7   :  { %1784 = vmatprep.subr.bf16.mxu1 %v1968_v36 }
 0x4ba   :  { %1785 = vmatpush3.bf16.msra.mxu1 %v1969_v1 }
 0x4bb   :  { %1786 = vmatprep.subr.bf16.mxu1 %v1970_v38 }
 0x4be   :  { %1787 = vmatpush3.bf16.msra.mxu1 %v1971_v39 }
 0x4c1   :  { %1495 = vmatmul.mubr.bf16.vlgmr.msra.gmra.mrb[20].mxu1 %v1363_v61 }
 0x4c2   :  { %2031 = shalt.err (!%p2028_p6)
}
 0x4c3   :  { %s2032_s17 = scalar_lea.hbm %s2476_s5, 32 }
 0x4c4   :  { %p2033_p7 = scmp.ne.s32.totalorder %s2476_s5, %s2032_s17  ;;  %p2036_p8 = scmp.lt.u32.totalorder %s2032_s17, %s2476_s5 }
 0x4c6   :  { %p2038_p9 = pnand %p2036_p8, %p2033_p7 }
 0x4c8   :  { %2041 = shalt.err (!%p2038_p9)
}
 0x4c9   :  { %1523 = dma.vmem_to_hbm [thread:$0]  %s1521_s13, 32, %s2476_s5, [#allocation4]  }
 0x4ca   :  { %s2126_s24 = smov [#allocation11]  }
 0x4cb   :  { %s1550_s25 = sshll.u32 %s2126_s24, 4  ;;  %s1551_s25 = int_to_ptr.vmem [resolvable:$true] %s1550_s25 }
 0x4cc   :  { %s2042_s26 = scalar_lea.vmem %s1551_s25, 32  ;;  %p2047_p11 = scmp.lt.s32.totalorder %s1551_s25, %s1551_s25 }
 0x4cd   :  { %p2043_p10 = scmp.ne.s32.totalorder %s1551_s25, %s2042_s26  ;;  %p2048_p12 = scmp.lt.s32.totalorder %s2042_s26, %s2042_s26 }
 0x4cf   :  { %p2049_p13 = por %p2048_p12, %p2047_p11 }
 0x4d1   :  { %p2050_p0 = pnand %p2049_p13, %p2043_p10 }
 0x4d3   :  { %2053 = shalt.err (!%p2050_p0)
}
 0x4d4   :  { %s2054_s3 = scalar_lea.hbm %s2479_s8, 32 }
 0x4d5   :  { %p2055_p1 = scmp.ne.s32.totalorder %s2479_s8, %s2054_s3  ;;  %p2058_p2 = scmp.lt.u32.totalorder %s2054_s3, %s2479_s8 }
 0x4d7   :  { %p2060_p3 = pnand %p2058_p2, %p2055_p1 }
 0x4d9   :  { %2063 = shalt.err (!%p2060_p3)
}
 0x4da   :  { %1553 = dma.vmem_to_hbm [thread:$0]  %s1551_s25, 32, %s2479_s8, [#allocation12]   ;;  %v864_v9 = vld [vmem:[#allocation5 + $0x4] ss:$0 sm:$0xff]  ;;  %v1365_v0 = vld [vmem:[#allocation5 + $0x7] ss:$0 sm:$0xff] }
 0x4db   :  { %s2127_s8 = smov [#allocation8]   ;;  %s2128_s11 = smov [#allocation10]   ;;  %vm1510_vm4 = vcmask 517120  }
 0x4dc   :  { %s1530_s0 = sshll.u32 %s2127_s8, 4  ;;  %s1540_s1 = sshll.u32 %s2128_s11, 4  ;;  %s1531_s0 = int_to_ptr.vmem [resolvable:$true] %s1530_s0  ;;  %s1541_s1 = int_to_ptr.vmem [resolvable:$true] %s1540_s1 }
 0x4dd   :  { %s2064_s12 = scalar_lea.vmem %s1531_s0, 32  ;;  %p2069_p5 = scmp.lt.s32.totalorder %s1531_s0, %s1531_s0 }
 0x4de   :  { %p2065_p4 = scmp.ne.s32.totalorder %s1531_s0, %s2064_s12  ;;  %p2070_p6 = scmp.lt.s32.totalorder %s2064_s12, %s2064_s12 }
 0x4e0   :  { %p2071_p7 = por %p2070_p6, %p2069_p5 }
 0x4e2   :  { %p2072_p8 = pnand %p2071_p7, %p2065_p4 }
 0x574   :  { %v1766_v57 = vpop.f32.mrb[16].mxu1 }
 0x575   :  { %v1767_v11 = vpop.f32.mrb[17].mxu1 }
 0x576   :  { %v1768_v43 = vadd.f32 %v1767_v11, %v1766_v57  ;;  %v1769_v32 = vpop.f32.mrb[18].mxu1 }
 0x577   :  { %v1770_v55 = vpop.f32.mrb[19].mxu1 }
 0x578   :  { %v996_v56 = vadd.f32 %v1768_v43, %v864_v9 }
 0x57a   :  { %1512 = vst.msk [vmem:[#allocation10] sm:$0x3] %vm1508_vm1, %v996_v56 }
 0x594   :  { %v1788_v58 = vpop.f32.mrb[20].mxu1 }
 0x595   :  { %v1789_v41 = vpop.f32.mrb[21].mxu1 }
 0x596   :  { %v1790_v40 = vadd.f32 %v1789_v41, %v1788_v58  ;;  %v1791_v45 = vpop.f32.mrb[22].mxu1 }
 0x597   :  { %v1792_v46 = vpop.f32.mrb[23].mxu1 }
 0x598   :  { %v1497_v47 = vadd.f32 %v1790_v40, %v1365_v0 }
 0x59a   :  { %v1705_v48 = vmul.f32 -1.442695, %v1497_v47 }
 0x59c   :  { %1972 = vpow2.f32 %v1705_v48 }
 0x5a6   :  { %v1973_v49 = vpop.eup %1972 }
 0x5a7   :  { %v1505_v50 = vadd.f32 1.0, %v1973_v49 }
 0x5a9   :  { %1974 = vrcp.f32 %v1505_v50 }
 0x5b3   :  { %v1975_v51 = vpop.eup %1974 }
 0x5b4   :  { %1511 = vst.msk [vmem:[#allocation8] sm:$0x3] %vm1510_vm4, %v1975_v51 }
 0x5b5   :  { %2075 = shalt.err (!%p2072_p8)
}
 0x5b6   :  { %s2076_s14 = scalar_lea.hbm %s2477_s6, 32 }
 0x5b7   :  { %p2077_p9 = scmp.ne.s32.totalorder %s2477_s6, %s2076_s14  ;;  %p2080_p10 = scmp.lt.u32.totalorder %s2076_s14, %s2477_s6 }
 0x5b9   :  { %p2082_p11 = pnand %p2080_p10, %p2077_p9 }
 0x5bb   :  { %2085 = shalt.err (!%p2082_p11)
}
 0x5bc   :  { %1533 = dma.vmem_to_hbm [thread:$0]  %s1531_s0, 32, %s2477_s6, [#allocation9]  }
 0x5bd   :  { %s2086_s21 = scalar_lea.vmem %s1541_s1, 32  ;;  %p2091_p13 = scmp.lt.s32.totalorder %s1541_s1, %s1541_s1 }
 0x5be   :  { %p2087_p12 = scmp.ne.s32.totalorder %s1541_s1, %s2086_s21  ;;  %p2092_p0 = scmp.lt.s32.totalorder %s2086_s21, %s2086_s21 }
 0x5c0   :  { %p2093_p1 = por %p2092_p0, %p2091_p13 }
 0x5c2   :  { %p2094_p2 = pnand %p2093_p1, %p2087_p12 }
 0x5c4   :  { %2097 = shalt.err (!%p2094_p2)
}
 0x5c5   :  { %s2098_s24 = scalar_lea.hbm %s2478_s7, 32 }
 0x5c6   :  { %p2099_p3 = scmp.ne.s32.totalorder %s2478_s7, %s2098_s24  ;;  %p2102_p4 = scmp.lt.u32.totalorder %s2098_s24, %s2478_s7 }
 0x5c8   :  { %p2104_p5 = pnand %p2102_p4, %p2099_p3 }
 0x5ca   :  { %2107 = shalt.err (!%p2104_p5)
}
 0x5cb   :  { %1543 = dma.vmem_to_hbm [thread:$0]  %s1541_s1, 32, %s2478_s7, [#allocation9]  }
 0x5cc   :  { %2112 = dma.done.wait [#allocation4], 32  }
 0x5cd   :  { %2113 = vsyncadd [#allocation4], 4294967264 }
 0x5ce   :  { %2114 = dma.done.wait [#allocation9], 64  }
 0x5cf   :  { %2115 = vsyncadd [#allocation9], 4294967232 }
 0x5d0   :  { %2116 = dma.done.wait [#allocation12], 32  }
 0x5d1   :  { %2117 = vsyncadd [#allocation12], 4294967264 }
 0x5d2   :  { %1566 = vsyncpa [#allocation3], 1 }
 0x5d3   :  { %1567 = vsyncpa [#allocation6], 1 }
 0x5d4   :  { %1568 = vsyncpa [#allocation4], 1 }
 0x5d5   :  { %1569 = vsyncpa [#allocation9], 1 }
 0x5d6   :  { %1570 = vsyncpa [#allocation12], 1 }

</bundles_post_ra>
